<compile_context>
chip_gen: v7x
topology: tpu7x:2x2x1
jax: 0.10.0
libtpu: 0.0.40
codegen_flags: <defaults>
</compile_context>

<pallas_src>
import functools

import jax
import jax.numpy as jnp
from jax import lax
from jax.experimental import pallas as pl
from jax.experimental.pallas import tpu as pltpu


def _round_up(x: int, m: int) -> int:
    return ((x + m - 1) // m) * m


def _round_down(x: int, m: int) -> int:
    return max(m, (x // m) * m)


# ----------------------------------------------------------------------------
# Kernel: one [tile_b, tile_n] tile of  scores = q @ E^T.
#   q_ref : [tile_b, 2*rank]
#   e_ref : [tile_n, 2*rank]   (one tile of the unsliced entity table)
#   o_ref : [tile_b, tile_n]
# Contraction on the last dim of both operands -> MXU consumes the RHS
# transposed natively (no XLU relayout), accumulation in f32.
# ----------------------------------------------------------------------------
def _score_kernel(q_ref, e_ref, o_ref):
    o_ref[...] = lax.dot_general(
        q_ref[...],
        e_ref[...],
        dimension_numbers=(((1,), (1,)), ((), ())),
        preferred_element_type=jnp.float32,
    ).astype(o_ref.dtype)


def complex_forward(x, ent_emb, rel_emb, rank, *,
                    tile_n=None,
                    tile_b=256,                 # TODO(synk): use 128 on v5e (128-wide MXU).
                    out_dtype=jnp.float32,
                    compute_dtype=None,
                    entity_tile_bytes=4 * 1024 * 1024,
                    vmem_budget_frac=0.75):
    """ComplEx.forward: returns (scores [B, n_ent], (f_lhs, f_rel, f_rhs)).

    compute_dtype=None => stream the entity table in its stored dtype (no
    per-call cast). For a bf16 fast path, store ent_emb/rel_emb in bf16
    persistently (cast once outside the training step) and just pass them in.
    """
    B = x.shape[0]
    n_ent, width = ent_emb.shape
    assert width == 2 * rank

    if compute_dtype is None:
        compute_dtype = ent_emb.dtype

    # --- glue: embedding gathers + complex Hadamard (fused by XLA) ---
    # TODO(synk): jnp.take clamps out-of-range ids (torch.nn.Embedding raises).
    lhs = jnp.take(ent_emb, x[:, 0], axis=0).astype(jnp.float32)
    rel = jnp.take(rel_emb, x[:, 1], axis=0).astype(jnp.float32)
    rhs = jnp.take(ent_emb, x[:, 2], axis=0).astype(jnp.float32)

    lr, li = lhs[:, :rank], lhs[:, rank:]
    rr, ri = rel[:, :rank], rel[:, rank:]
    hr, hi = rhs[:, :rank], rhs[:, rank:]

    # q = [q_re | q_im]  so that  scores = q @ [E_re | E_im]^T (== get_queries).
    q = jnp.concatenate([lr * rr - li * ri, lr * ri + li * rr], axis=1)

    # Regularization factors: tiny [B, rank] elementwise math -> plain JAX.
    factors = (
        jnp.sqrt(lr * lr + li * li),
        jnp.sqrt(rr * rr + ri * ri),
        jnp.sqrt(hr * hr + hi * hi),
    )

    # No per-call cast of the big table: only cast if the caller explicitly
    # requests a compute dtype different from the stored one.
    e_c = ent_emb if ent_emb.dtype == compute_dtype else ent_emb.astype(compute_dtype)
    q_c = q.astype(compute_dtype)

    dtype_bytes = jnp.dtype(compute_dtype).itemsize
    out_bytes = jnp.dtype(out_dtype).itemsize

    # --- batch tiling (innermost grid axis) ---
    tb = tile_b if B > tile_b else B
    grid_b = pl.cdiv(B, tb)

    # --- entity tile sized by bytes, 128-aligned ---
    n_ent_pad = _round_up(n_ent, 128)
    if tile_n is None:
        tn = _round_down(entity_tile_bytes // max(1, width * dtype_bytes), 128)
    else:
        tn = _round_up(tile_n, 128)
    tn = min(tn, n_ent_pad)
    # Ensure >= 2 entity tiles when possible so v7x megacore shards the sweep.
    if tn >= n_ent_pad and n_ent_pad >= 256:
        tn = _round_up(n_ent_pad // 2, 128)

    q_bufs = 1 if grid_b == 1 else 2

    def working_set(t):
        return (2 * t * width * dtype_bytes          # double-buffered entity tile
                + 2 * tb * t * out_bytes             # double-buffered output tile
                + q_bufs * tb * width * dtype_bytes)  # query block

    # Per-generation VMEM budget (64 MiB/TC on v7x, 128 MiB on v5e/v6e).
    try:
        vmem_cap = pltpu.get_tpu_info().vmem_capacity_bytes
    except Exception:
        vmem_cap = 64 * 1024 * 1024
    budget = int(vmem_cap * vmem_budget_frac)
    while tn > 128 and working_set(tn) > budget:
        tn = _round_up(tn // 2, 128)

    grid_n = pl.cdiv(n_ent, tn)
    vmem_limit = min(max(int(working_set(tn) * 1.3) + (1 << 20),
                         16 * 1024 * 1024), budget)

    # --- BlockSpecs ---
    if grid_b == 1:
        # Constant index_map -> a single buffer suffices; reclaim VMEM.
        q_spec = pl.BlockSpec((tb, width), lambda j, b: (b, 0),
                              pipeline_mode=pl.Buffered(1))
    else:
        q_spec = pl.BlockSpec((tb, width), lambda j, b: (b, 0))
    # Entity tile depends only on the OUTER axis -> revisited (not re-DMA'd)
    # across the inner batch steps.
    e_spec = pl.BlockSpec((tn, width), lambda j, b: (j, 0))
    o_spec = pl.BlockSpec((tb, tn), lambda j, b: (b, j))

    cost = pl.CostEstimate(
        flops=2 * B * n_ent * width,
        transcendentals=0,
        bytes_accessed=(grid_b * n_ent * width * dtype_bytes   # E streamed per batch tile
                        + B * width * dtype_bytes              # q
                        + B * n_ent * out_bytes),              # scores writeback
    )

    scores = pl.pallas_call(
        _score_kernel,
        out_shape=jax.ShapeDtypeStruct((B, n_ent), out_dtype),
        grid_spec=pltpu.PrefetchScalarGridSpec(
            num_scalar_prefetch=0,
            grid=(grid_n, grid_b),
            in_specs=[q_spec, e_spec],
            out_specs=o_spec,
        ),
        compiler_params=pltpu.CompilerParams(
            dimension_semantics=("parallel", "parallel"),
            vmem_limit_bytes=vmem_limit,
        ),
        cost_estimate=cost,
    )(q_c, e_c)

    return scores, factors


def complex_forward_ref(x, ent_emb, rel_emb, rank):
    """Pure-JAX reference matching the PyTorch module semantics (f32 math)."""
    lhs = jnp.take(ent_emb, x[:, 0], axis=0).astype(jnp.float32)
    rel = jnp.take(rel_emb, x[:, 1], axis=0).astype(jnp.float32)
    rhs = jnp.take(ent_emb, x[:, 2], axis=0).astype(jnp.float32)
    lr, li = lhs[:, :rank], lhs[:, rank:]
    rr, ri = rel[:, :rank], rel[:, rank:]
    hr, hi = rhs[:, :rank], rhs[:, rank:]
    e = ent_emb.astype(jnp.float32)
    e_re, e_im = e[:, :rank], e[:, rank:]
    scores = (lr * rr - li * ri) @ e_re.T + (lr * ri + li * rr) @ e_im.T
    return scores, (
        jnp.sqrt(lr ** 2 + li ** 2),
        jnp.sqrt(rr ** 2 + ri ** 2),
        jnp.sqrt(hr ** 2 + hi ** 2),
    )


if __name__ == "__main__":
    # Small synthetic setup: sizes = (n_ent, n_rel, n_ent), rank, init_size.
    n_ent, n_rel = 256, 16
    rank = 32
    init_size = 0.001
    B = 8

    key = jax.random.PRNGKey(0)
    k_ent, k_rel, k_l, k_r, k_h = jax.random.split(key, 5)

    # nn.Embedding default init N(0,1), then scaled by init_size.
    ent_emb = jax.random.normal(k_ent, (n_ent, 2 * rank), jnp.float32) * init_size
    rel_emb = jax.random.normal(k_rel, (n_rel, 2 * rank), jnp.float32) * init_size

    x = jnp.stack(
        [
            jax.random.randint(k_l, (B,), 0, n_ent),
            jax.random.randint(k_r, (B,), 0, n_rel),
            jax.random.randint(k_h, (B,), 0, n_ent),
        ],
        axis=1,
    ).astype(jnp.int32)

    # ---- 1) f32 path: exact match against the pure-JAX reference. ----
    fwd_f32 = jax.jit(functools.partial(complex_forward, rank=rank))
    scores, factors = fwd_f32(x, ent_emb, rel_emb)
    jax.block_until_ready(scores)
    jax.block_until_ready(factors)

    scores_ref, factors_ref = complex_forward_ref(x, ent_emb, rel_emb, rank)
    assert scores.shape == (B, n_ent)
    assert jnp.allclose(scores, scores_ref, atol=1e-6, rtol=1e-5)
    for f, fr in zip(factors, factors_ref):
        assert f.shape == (B, rank)
        assert jnp.allclose(f, fr, atol=1e-6, rtol=1e-5)

    # ---- 2) batch-tiled 2-D grid path (entity outer, batch innermost). ----
    B2 = 16
    k_l2, k_r2, k_h2 = jax.random.split(jax.random.PRNGKey(1), 3)
    x2 = jnp.stack(
        [
            jax.random.randint(k_l2, (B2,), 0, n_ent),
            jax.random.randint(k_r2, (B2,), 0, n_rel),
            jax.random.randint(k_h2, (B2,), 0, n_ent),
        ],
        axis=1,
    ).astype(jnp.int32)
    fwd_bt = jax.jit(functools.partial(complex_forward, rank=rank, tile_b=8))
    scores_bt, _ = fwd_bt(x2, ent_emb, rel_emb)
    jax.block_until_ready(scores_bt)
    scores_bt_ref, _ = complex_forward_ref(x2, ent_emb, rel_emb, rank)
    assert scores_bt.shape == (B2, n_ent)
    assert jnp.allclose(scores_bt, scores_bt_ref, atol=1e-6, rtol=1e-5)

    # ---- 3) bf16 path: tables stored persistently in bf16 (cast OUTSIDE the
    #         step -> no per-call convert of the big table), O(1)-scale
    #         embeddings so the tolerance is meaningful. ----
    ent_o1 = jax.random.normal(k_ent, (n_ent, 2 * rank), jnp.float32)
    rel_o1 = jax.random.normal(k_rel, (n_rel, 2 * rank), jnp.float32)
    ent_bf16 = ent_o1.astype(jnp.bfloat16)
    rel_bf16 = rel_o1.astype(jnp.bfloat16)
    fwd_bf16 = jax.jit(functools.partial(complex_forward, rank=rank))
    scores_bf16, _ = fwd_bf16(x, ent_bf16, rel_bf16)
    jax.block_until_ready(scores_bf16)
    # Reference uses the same bf16-rounded tables, upcast to f32.
    ref_bf16, _ = complex_forward_ref(
        x, ent_bf16.astype(jnp.float32), rel_bf16.astype(jnp.float32), rank)
    assert scores_bf16.shape == (B, n_ent)
    assert jnp.allclose(scores_bf16.astype(jnp.float32), ref_bf16,
                        atol=0.5, rtol=5e-2)

    print("KERNEL_OK")
</pallas_src>

<mosaic_0001>
module attributes {stable_mosaic.version = 11 : i64} {
  func.func @_score_kernel(%arg0: i32, %arg1: i32, %arg2: memref<8x64xf32, #tpu.memory_space<vmem>>, %arg3: memref<128x64xf32, #tpu.memory_space<vmem>>, %arg4: memref<8x128xf32, #tpu.memory_space<vmem>>) attributes {dimension_semantics = [#tpu.dimension_semantics<parallel>, #tpu.dimension_semantics<parallel>], iteration_bounds = array<i64: 2, 1>, scalar_prefetch = 0 : i64, scratch_operands = 0 : i64, tpu.core_type = #tpu.core_type<tc>, window_params = [{pipeline_mode = #tpu.pipeline_mode<synchronous>, transform_indices = @transform_0, window_bounds = array<i64: 8, 64>}, {transform_indices = @transform_1, window_bounds = array<i64: 128, 64>}, {transform_indices = @transform_2, window_bounds = array<i64: 8, 128>}]} {
    %c0 = arith.constant 0 : index
    %c0_0 = arith.constant 0 : index
    %0 = vector.load %arg2[%c0, %c0_0] : memref<8x64xf32, #tpu.memory_space<vmem>>, vector<8x64xf32>
    %c0_1 = arith.constant 0 : index
    %c0_2 = arith.constant 0 : index
    %1 = vector.load %arg3[%c0_1, %c0_2] : memref<128x64xf32, #tpu.memory_space<vmem>>, vector<128x64xf32>
    %cst = arith.constant dense<0.000000e+00> : vector<8x128xf32>
    %2 = tpu.matmul %0, %1, %cst {dimension_numbers = #tpu.dot_dimension_numbers<[1], [1], [0], [0], [0, 0, 1, 0], [], []>} : vector<8x64xf32>, vector<128x64xf32>, vector<8x128xf32> -> vector<8x128xf32>
    %c0_3 = arith.constant 0 : index
    %c0_4 = arith.constant 0 : index
    %3 = vector.load %arg4[%c0_3, %c0_4] : memref<8x128xf32, #tpu.memory_space<vmem>>, vector<8x128xf32>
    tpu.vector_store %arg4[%c0_3, %c0_4], %2 {strides = array<i32>} : memref<8x128xf32, #tpu.memory_space<vmem>>, vector<8x128xf32>,
    return
  }
  func.func @transform_0(%arg0: i32, %arg1: i32) -> (i32, i32) {
    %c0_i32 = arith.constant 0 : i32
    %c0_i32_0 = arith.constant 0 : i32
    return %arg1, %c0_i32 : i32, i32
  }
  func.func @transform_1(%arg0: i32, %arg1: i32) -> (i32, i32) {
    %c0_i32 = arith.constant 0 : i32
    %c0_i32_0 = arith.constant 0 : i32
    return %arg0, %c0_i32 : i32, i32
  }
  func.func @transform_2(%arg0: i32, %arg1: i32) -> (i32, i32) {
    %c0_i32 = arith.constant 0 : i32
    return %arg1, %arg0 : i32, i32
  }
}

</mosaic_0001>

<bundles_post_ra>
// kernel: complex_forward.1
= control target key start
LH: loop header
LB: loop body
LE: loop exit
PB: predicated region body
PF: predicated region fallthrough
CT: control target
= control target key end

     0   :  { %7 = vsyncpa [#allocation3], 0  ;;  %s841_s0 = inlined_call_operand.vmem [shape: f32[8,64], index: 0, kind: input, shape index: {}]   ;;  %s842_s1 = inlined_call_operand.vmem [shape: f32[256,64], index: 1, kind: input, shape index: {}]   ;;  %s843_s2 = inlined_call_operand.hbm [shape: f32[8,256], index: 2, kind: output, shape index: {}]  }
   0x1   :  { %9 = vsyncpa [#allocation3 + $0x1], 0  ;;  %s686_s9 = smov 0   ;;  %s688_s10 = smov 0  }
   0x2   :  { %s690_s11 = smov 0   ;;  %s692_s12 = smov 0  }
   0x3   :  { %s694_s13 = smov 0   ;;  %s696_s14 = smov 0  }
   0x4 LB: > { %s415_s15 = sadd.s32 4294967295, %s665_s14   ;;  %s416_s16 = sadd.s32 4294967294, %s665_s14   ;;  %s665_s14 = sphi %s696_s14, %s15_s14   ;;  %s661_s13 = sphi %s694_s13, %s852_s13   ;;  %s657_s12 = sphi %s692_s12, %s851_s12   ;;  %s653_s11 = sphi %s690_s11, %s850_s11   ;;  %s649_s10 = sphi %s688_s10, %s849_s10   ;;  %s645_s9 = sphi %s686_s9, %s848_s9  }
   0x5   : > { %s27_s17 = sadd.s32 1, %s661_s13  ;;  %s88_s18 = sadd.s32 1, %s653_s11 }
   0x6   : > { %p29_p0 = scmp.ge.s32.totalorder %s27_s17, 2  ;;  %p98_p1 = scmp.ne.s32.totalorder %s653_s11, %s649_s10 }
   0x7   : > { %p99_p2 = scmp.eq.s32.totalorder %s415_s15, 1  ;;  %p104_p3 = scmp.ne.s32.totalorder %s649_s10, %s645_s9 }
   0x8   : > { %s854_s17 = smov (%p29_p0, %s27_s17), 0  ;;  %p105_p5 = scmp.eq.s32.totalorder %s416_s16, 1 }
   0x9   : > { %p726_p4 = por %p99_p2, %p98_p1  ;;  %s84_s20 = ssub.s32 %s661_s13, %s854_s17 }
   0xa   : > { %p420_p6 = scmp.ge.s32.totalorder %s665_s14, 1  ;;  %p86_p7 = scmp.eq.s32.totalorder %s84_s20, 0 }
   0xb   : > { %p733_p8 = por %p105_p5, %p104_p3  ;;  %p139_p9 = scmp.lt.s32.totalorder %s665_s14, 3 }
   0xc   : > { %s739_s22 = scalar_select %p86_p7, %s653_s11, %s88_s18  }
   0xd   : > { %p140_p10 = pnand %p420_p6, %p139_p9 }
   0xe   : > { %s422_s23 = sshll.u32 (!%p140_p10), %s657_s12, 4  ;;  %v667_v0 = vmov (!%p140_p10), 0.0|0.0   ;;  %vm668_vm0 = vmmov (!%p140_p10), 0   ;;  %v669_v1 = vmov (!%p140_p10), 0.0   ;;  %vm192_vm1 = vcmask (!%p140_p10), 523264   ;;  %v175_v27 = vld [vmem:[%s841_s0] sm:$0xff] (!%p140_p10) }
   0xf   : > { %143 = sbr.rel (%p140_p10) target bundleno = 317 (0x13d), region = 28  ;;  %497 = vmatprep.subr.bf16.mxu0 (!%p140_p10), %v667_v0  ;;  %p170_p11 = scmp.lt.s32.totalorder (!%p140_p10), %s422_s23, 31  ;;  %494 = vmatprep.mubr.msk.f32.mxu0 (!%p140_p10), %vm668_vm0, %v669_v1  ;;  %vm751_vm2 = vmpackc.low (!%p140_p10), %vm192_vm1, %vm192_vm1 }
  0x10   : > { %s162_s30 = sand.u32 (!%p140_p10), 1, %s649_s10   ;;  %s442_s6 = sshll.u32 (!%p140_p10), %s657_s12, 7 }
  0x11   : > { %s421_s3 = sshll.u32 (!%p140_p10), %s162_s30, 3  ;;  %s796_s15 = scalar_lea.hbm (!%p140_p10), %s843_s2, %s442_s6 }
  0x12   : > { %s164_s4 = scalar_lea.vmem (!%p140_p10), [#allocation2], %s421_s3  ;;  %s316_s16 = scalar_lea.sflag (!%p140_p10), [#allocation3], %s162_s30 }
  0x13   : > { %s331_s5 = sshll.u32 (!%p140_p10), %s164_s4, 4  ;;  %s670_s12 = smov (!%p140_p10), [#allocation2]   ;;  %s791_s5 = int_to_ptr.vmem [resolvable:$true] %s331_s5 }
  0x14   : > { %s587_s18 = scalar_lea.vmem (!%p140_p10), %s791_s5, 128  ;;  %s591_s20 = sshll.u32 (!%p140_p10), %s670_s12, 4  ;;  %s592_s20 = int_to_ptr.vmem [resolvable:$false] %s591_s20 }
  0x15   : > { %p588_p12 = scmp.ne.s32.totalorder (!%p140_p10), %s791_s5, %s587_s18  ;;  %p594_p1 = scmp.lt.s32.totalorder (!%p140_p10), %s791_s5, %s592_s20 }
  0x16   : > { %s856_s23 = smov (!%p170_p11, %s422_s23), 31 }
  0x17   : > { %s423_s24 = sshll.u32 %s856_s23, 3  ;;  %p589_p13 = pnand %p588_p12, %p726_p4 }
  0x18   : > { %s745_s27 = scalar_lea.vmem %s842_s1, %s423_s24  ;;  %s593_s23 = scalar_lea.vmem %s592_s20, 256 }
  0x19   : > { %v176_v2 = vld [vmem:[%s745_s27] sm:$0xff]  ;;  %v177_v3 = vld [vmem:[%s745_s27 + $0x8] sm:$0xff]  ;;  %v178_v6 = vld [vmem:[%s745_s27 + $0x10] sm:$0xff]  ;;  %p590_p0 = pneg %p589_p13  ;;  %p595_p2 = scmp.lt.s32.totalorder %s593_s23, %s587_s18 }
  0x1a   : > { %v498_v5 = vpack.c.bf16 %v177_v3, %v176_v2  ;;  %v179_v7 = vld [vmem:[%s745_s27 + $0x18] sm:$0xff]  ;;  %v180_v9 = vld [vmem:[%s745_s27 + $0x20] sm:$0xff]  ;;  %v181_v10 = vld [vmem:[%s745_s27 + $0x28] sm:$0xff] }
  0x1b   : > { %v502_v8 = vpack.c.bf16 %v179_v7, %v178_v6  ;;  %v506_v11 = vpack.c.bf16 %v181_v10, %v180_v9  ;;  %v182_v12 = vld [vmem:[%s745_s27 + $0x30] sm:$0xff]  ;;  %v183_v13 = vld [vmem:[%s745_s27 + $0x38] sm:$0xff]  ;;  %v184_v15 = vld [vmem:[%s745_s27 + $0x40] sm:$0xff]  ;;  %p596_p3 = por %p595_p2, %p594_p1 }
  0x1c   : > { %500 = vmatpush3.bf16.xpose.msk.msra.mxu0 %vm751_vm2, %v498_v5  ;;  %v510_v14 = vpack.c.bf16 %v183_v13, %v182_v12  ;;  %v185_v16 = vld [vmem:[%s745_s27 + $0x48] sm:$0xff]  ;;  %v186_v18 = vld [vmem:[%s745_s27 + $0x50] sm:$0xff]  ;;  %v187_v19 = vld [vmem:[%s745_s27 + $0x58] sm:$0xff] }
  0x1d   : > { %501 = vmatprep.subr.bf16.mxu0 %v667_v0  ;;  %v514_v17 = vpack.c.bf16 %v185_v16, %v184_v15  ;;  %v518_v20 = vpack.c.bf16 %v187_v19, %v186_v18  ;;  %v188_v21 = vld [vmem:[%s745_s27 + $0x60] sm:$0xff]  ;;  %v189_v22 = vld [vmem:[%s745_s27 + $0x68] sm:$0xff]  ;;  %v190_v24 = vld [vmem:[%s745_s27 + $0x70] sm:$0xff]  ;;  %p597_p5 = pnand %p596_p3, %p590_p0 }
  0x1e   : > { %v522_v23 = vpack.c.bf16 %v189_v22, %v188_v21  ;;  %v191_v25 = vld [vmem:[%s745_s27 + $0x78] sm:$0xff] }
  0x1f   : > { %v526_v26 = vpack.c.bf16 %v191_v25, %v190_v24 }
  0x24   : > { %504 = vmatpush3.bf16.xpose.msk.msra.mxu0 %vm751_vm2, %v502_v8 }
  0x25   : > { %505 = vmatprep.subr.bf16.mxu0 %v667_v0 }
  0x2c   : > { %508 = vmatpush3.bf16.xpose.msk.msra.mxu0 %vm751_vm2, %v506_v11 }
  0x2d   : > { %509 = vmatprep.subr.bf16.mxu0 %v667_v0 }
  0x34   : > { %512 = vmatpush3.bf16.xpose.msk.msra.mxu0 %vm751_vm2, %v510_v14 }
  0x35   : > { %513 = vmatprep.subr.bf16.mxu0 %v667_v0 }
  0x3c   : > { %516 = vmatpush3.bf16.xpose.msk.msra.mxu0 %vm751_vm2, %v514_v17 }
  0x3d   : > { %517 = vmatprep.subr.bf16.mxu0 %v667_v0 }
  0x44   : > { %520 = vmatpush3.bf16.xpose.msk.msra.mxu0 %vm751_vm2, %v518_v20 }
  0x45   : > { %521 = vmatprep.subr.bf16.mxu0 %v667_v0 }
  0x4c   : > { %524 = vmatpush3.bf16.xpose.msk.msra.mxu0 %vm751_vm2, %v522_v23 }
  0x4d   : > { %525 = vmatprep.subr.bf16.mxu0 %v667_v0 }
  0x54   : > { %528 = vmatpush3.bf16.xpose.msk.msra.mxu0 %vm751_vm2, %v526_v26 }
  0x5b   : > { %495 = vmatmul.mubr.msk.f32.vlgmr.msra.gmra.mrb[0].mxu0 %vm192_vm1, %v175_v27 }
 0x12e   : > { %v310_v28 = vpop.f32.mrb[0].mxu0 }
 0x12f   : > { %314 = vst [vmem:[%s164_s4] sm:$0xff] %v310_v28  ;;  %v496_v29 = vpop.f32.mrb[1].mxu0 }
 0x130   : > { %600 = shalt.err (!%p597_p5)
}
 0x131   : > { %s601_s24 = scalar_lea.hbm %s796_s15, 128  ;;  %s605_s27 = scalar_lea.hbm %s843_s2, 256 }
 0x132   : > { %p602_p6 = scmp.ne.s32.totalorder %s796_s15, %s601_s24  ;;  %p606_p10 = scmp.lt.u32.totalorder %s796_s15, %s843_s2 }
 0x133   : > { %p607_p11 = scmp.lt.u32.totalorder %s605_s27, %s601_s24  ;;  %p609_p13 = scmp.lt.u32.totalorder %s601_s24, %s796_s15 }
 0x134   : > { %p603_p7 = pnand %p602_p6, %p726_p4 }
 0x135   : > { %p608_p12 = por %p607_p11, %p606_p10 }
 0x136   : > { %p604_p9 = pneg %p603_p7 }
 0x137   : > { %p610_p0 = por %p609_p13, %p608_p12 }
 0x139   : > { %p611_p1 = pnand %p610_p0, %p604_p9 }
 0x13b   : > { %614 = shalt.err (!%p611_p1)
}
 0x13c   : > { %529 = dma.vmem_to_hbm [thread:$0]  (%p726_p4), %s791_s5, 128, %s796_s15, %s316_s16  }
 0x13d PF: > { %p535_p2 = scmp.ge.s32.totalorder %s665_s14, 2  ;;  %s343_s30 = sand.u32 1, %s645_s9  }
 0x13e   : > { %s344_s3 = scalar_lea.sflag [#allocation3], %s343_s30 }
 0x13f   : > { %p532_p3 = pnand %p535_p2, %p733_p8 }
 0x141   : > { %640 = dma.done.wait (!%p532_p3), %s344_s3, 128  }
 0x142   : > { %642 = vsyncadd (!%p532_p3), %s344_s3, 4294967168  ;;  %s15_s14 = sadd.s32 1, %s665_s14   ;;  %s848_s9 = smov %s649_s10 }
 0x143   : > { %p12_p5 = scmp.ge.s32.totalorder %s15_s14, 4   ;;  %s849_s10 = smov %s653_s11 }
 0x144   : > { %s850_s11 = smov %s739_s22  ;;  %s851_s12 = smov %s661_s13 }
 0x145   : > { %s852_s13 = smov %s854_s17  ;;  %14 = sbr.rel (!%p12_p5) target bundleno = 4 (0x4), region = 66 }
 0x14c   :  { %349 = vsyncpa [#allocation3], 1 }
 0x14d   :  { %351 = vsyncpa [#allocation3 + $0x1], 1 }

</bundles_post_ra>
